<compile_context>
chip_gen: v5e
topology: v5e:2x2
jax: 0.10.0
libtpu: 0.0.40
codegen_flags: <defaults>
</compile_context>

<pallas_src>
import math

import jax
import jax.numpy as jnp
from jax.experimental import pallas as pl
from jax.experimental.pallas import tpu as pltpu

# Synthetic stand-in for rev_glue_data_id_map and per-task heads.
REV_GLUE_DATA_ID_MAP = {0: "cola", 1: "stsb", 2: "mnli"}
TASK_NUM_LABELS = {"cola": 2, "stsb": 1, "mnli": 3}
NUM_TASKS = len(REV_GLUE_DATA_ID_MAP)
DMAX = max(TASK_NUM_LABELS.values())
DPAD = 128                      # lane-dense per-task label-slot width
NEG_FILL = -1000.0


# ------------------------------ small helpers ------------------------------
def _softmax(x, axis=-1):
    m = jnp.max(x, axis=axis, keepdims=True)
    e = jnp.exp(x - m)
    return e / jnp.sum(e, axis=axis, keepdims=True)


def _layernorm(x, eps=1e-5):
    # TODO(synk): real BERT LayerNorm has learnable gamma/beta; the synthetic
    # base model omits them (kernel and reference agree).
    mu = jnp.mean(x, axis=-1, keepdims=True)
    var = jnp.mean((x - mu) ** 2, axis=-1, keepdims=True)
    return (x - mu) * jax.lax.rsqrt(var + eps)


# ------------- fused kernel: encoder layer + pooler + task head (one example per grid step) -------------
def fused_kernel(ds_ref,                                   # scalar prefetch (SMEM), unused in body
                 emb_ref, mask_ref, pos_ref,               # per-example activations / resident pos table
                 wqkv_ref, wo_ref, w1_ref, b1_ref, w2_ref, b2_ref,
                 wp_ref, bp_ref, wh_ref, bh_ref, valid_ref,
                 out_ref):
    S, H = pos_ref.shape
    inv_sqrt_h = 1.0 / math.sqrt(H)

    # Fold the positional-embedding add in-kernel; residual path stays f32.
    x = emb_ref[0] + pos_ref[...]                                    # (S, H) f32
    xb = x.astype(jnp.bfloat16)                                      # MXU operand

    # Fused QKV projection: one (S, H) x (H, 3H) matmul, f32 accumulation.
    qkv = jnp.dot(xb, wqkv_ref[...], preferred_element_type=jnp.float32)   # (S, 3H)
    # NOTE: slice offsets H / 2H are lane-aligned only when H % 128 == 0
    # (true for real BERT H=768); at the tiny demo H=32 this is a small VMEM copy.
    q = qkv[:, :H].astype(jnp.bfloat16)
    k = qkv[:, H:2 * H].astype(jnp.bfloat16)
    v = qkv[:, 2 * H:].astype(jnp.bfloat16)

    # Attention scores / softmax in f32 (mask uses 1e9; bf16 would not survive).
    scores = jax.lax.dot_general(q, k, (((1,), (1,)), ((), ())),
                                 preferred_element_type=jnp.float32) * inv_sqrt_h   # (S, S)
    scores = scores + (mask_ref[0] - 1.0) * 1e9                                     # mask: (1, S)

    m = jnp.max(scores, axis=-1, keepdims=True)
    e = jnp.exp(scores - m)
    p = e * pl.reciprocal(jnp.sum(e, axis=-1, keepdims=True), approx=True)  # EUP slot

    attn = jnp.dot(p.astype(jnp.bfloat16), v,
                   preferred_element_type=jnp.float32)                      # (S, H)

    h = _layernorm(x + jnp.dot(attn.astype(jnp.bfloat16), wo_ref[...],
                               preferred_element_type=jnp.float32))
    ff = jax.nn.gelu(jnp.dot(h.astype(jnp.bfloat16), w1_ref[...],
                             preferred_element_type=jnp.float32) + b1_ref[...],
                     approximate=True)
    h2 = _layernorm(h + jnp.dot(ff.astype(jnp.bfloat16), w2_ref[...],
                                preferred_element_type=jnp.float32) + b2_ref[...])

    # Pooler on the [CLS] row only, then this example's task head (selected by
    # the data-dependent index_map on wh/bh/valid -- no in-kernel select loop).
    cls = h2[0:1, :]                                                         # (1, H)
    pool = jnp.tanh(jnp.dot(cls.astype(jnp.bfloat16), wp_ref[...],
                            preferred_element_type=jnp.float32) + bp_ref[...])
    logits = jnp.dot(pool.astype(jnp.bfloat16), wh_ref[0],
                     preferred_element_type=jnp.float32) + bh_ref[0]         # (1, DPAD)
    out_ref[0] = jnp.where(valid_ref[0] > 0.5, logits, NEG_FILL)


def run_model(emb_no_pos, attention_mask, dataset_ids, p):
    """emb_no_pos: (B,S,H) f32 token+type embeddings (pos added in-kernel)."""
    B, S, H = emb_no_pos.shape
    F = p["w1"].shape[1]
    bf = lambda w: w.astype(jnp.bfloat16)       # weights -> bf16 at the call boundary
    mask3 = attention_mask.reshape(B, 1, S).astype(jnp.float32)

    grid_spec = pltpu.PrefetchScalarGridSpec(
        num_scalar_prefetch=1,                  # dataset_ids -> SMEM, drives head index_maps
        grid=(B,),
        in_specs=[
            pl.BlockSpec((1, S, H), lambda b, ds: (b, 0, 0)),         # emb (streams)
            pl.BlockSpec((1, 1, S), lambda b, ds: (b, 0, 0)),         # attention mask
            pl.BlockSpec((S, H), lambda b, ds: (0, 0)),               # pos_emb (resident)
            pl.BlockSpec((H, 3 * H), lambda b, ds: (0, 0)),           # fused QKV weight
            pl.BlockSpec((H, H), lambda b, ds: (0, 0)),               # wo
            pl.BlockSpec((H, F), lambda b, ds: (0, 0)),               # w1
            pl.BlockSpec((1, F), lambda b, ds: (0, 0)),               # b1
            pl.BlockSpec((F, H), lambda b, ds: (0, 0)),               # w2
            pl.BlockSpec((1, H), lambda b, ds: (0, 0)),               # b2
            pl.BlockSpec((H, H), lambda b, ds: (0, 0)),               # w_pool
            pl.BlockSpec((1, H), lambda b, ds: (0, 0)),               # b_pool
            pl.BlockSpec((1, H, DPAD), lambda b, ds: (ds[b], 0, 0)),  # task head weight
            pl.BlockSpec((1, 1, DPAD), lambda b, ds: (ds[b], 0, 0)),  # task head bias
            pl.BlockSpec((1, 1, DPAD), lambda b, ds: (ds[b], 0, 0)),  # task valid mask
        ],
        out_specs=pl.BlockSpec((1, 1, DPAD), lambda b, ds: (b, 0, 0)),
    )

    out = pl.pallas_call(
        fused_kernel,
        out_shape=jax.ShapeDtypeStruct((B, 1, DPAD), jnp.float32),   # lane-dense store
        grid_spec=grid_spec,
        compiler_params=pltpu.CompilerParams(
            dimension_semantics=("parallel",),          # megacore batch sharding on v7x
            # 48 MiB fits every generation (v7x physical VMEM is 64 MiB);
            # on v6e/v5e this can be raised / retuned with larger row tiles.
            vmem_limit_bytes=48 * 1024 * 1024,
        ),
    )(dataset_ids, emb_no_pos, mask3, p["pos_emb"],
      bf(p["wqkv"]), bf(p["wo"]), bf(p["w1"]), p["b1"], bf(p["w2"]), p["b2"],
      bf(p["w_pool"]), p["b_pool"],
      bf(p["w_heads"]), p["b_heads"], p["head_valid"])
    return out.reshape(B, DPAD)


# ------------------------------ parameter setup ------------------------------
def init_params(key, vocab, S, H, F):
    ks = jax.random.split(key, 10)
    std = 0.02
    p = {
        "tok_emb": jax.random.normal(ks[0], (vocab, H), jnp.float32) * std,
        "pos_emb": jax.random.normal(ks[1], (S, H), jnp.float32) * std,
        "type_emb": jax.random.normal(ks[2], (2, H), jnp.float32) * std,
        "wqkv": jax.random.normal(ks[3], (H, 3 * H), jnp.float32) * std,   # fused Q|K|V
        "wo": jax.random.normal(ks[4], (H, H), jnp.float32) * std,
        "w1": jax.random.normal(ks[5], (H, F), jnp.float32) * std,
        "b1": jnp.zeros((1, F), jnp.float32),
        "w2": jax.random.normal(ks[6], (F, H), jnp.float32) * std,
        "b2": jnp.zeros((1, H), jnp.float32),
        "w_pool": jax.random.normal(ks[7], (H, H), jnp.float32) * std,
        "b_pool": jnp.zeros((1, H), jnp.float32),
    }
    # Per-task heads packed into a (T, H, 128) stack: each task's real label
    # columns sit at positions 0..d-1 of its own 128-lane slot; the kernel's
    # scalar-prefetch index_map selects the slot for each example.
    w_heads = jnp.zeros((NUM_TASKS, H, DPAD), jnp.float32)
    b_heads = jnp.zeros((NUM_TASKS, 1, DPAD), jnp.float32)
    head_valid = jnp.zeros((NUM_TASKS, 1, DPAD), jnp.float32)
    hk = jax.random.split(ks[8], NUM_TASKS)
    for t in range(NUM_TASKS):
        d = TASK_NUM_LABELS[REV_GLUE_DATA_ID_MAP[t]]
        w_t = jax.random.normal(hk[t], (H, d), jnp.float32) * std
        b_t = jax.random.normal(jax.random.fold_in(hk[t], 1), (d,), jnp.float32) * std
        w_heads = w_heads.at[t, :, :d].set(w_t)
        b_heads = b_heads.at[t, 0, :d].set(b_t)
        head_valid = head_valid.at[t, 0, :d].set(1.0)
    p.update(w_heads=w_heads, b_heads=b_heads, head_valid=head_valid)
    return p


# ------------------------------ full forward ------------------------------
def multitask_forward(params, input_ids, attention_mask, dataset_ids,
                      token_type_ids=None, batch_max_labels=None):
    if token_type_ids is None:
        token_type_ids = jnp.zeros_like(input_ids)
    if batch_max_labels is None:
        # TODO(synk): fallback host readback (torch computes max(output_dims) over the
        # batch); prefer passing batch_max_labels as a host-side static to avoid the sync.
        ds_host = [int(d) for d in jax.device_get(dataset_ids)]
        batch_max_labels = max(TASK_NUM_LABELS[REV_GLUE_DATA_ID_MAP[d]] for d in ds_host)
    # Embedding gather stays in plain JAX (token + type); pos_emb is added in-kernel.
    emb = params["tok_emb"][input_ids] + params["type_emb"][token_type_ids]
    logits_pad = run_model(emb, attention_mask, dataset_ids, params)   # (B, DPAD) Pallas
    return {"logits": logits_pad[:, :batch_max_labels]}


# ------------------------------ pure-JAX reference (f32) ------------------------------
def reference_forward(params, input_ids, attention_mask, dataset_ids,
                      token_type_ids, batch_max_labels):
    H = params["wo"].shape[0]
    emb = (params["tok_emb"][input_ids] + params["pos_emb"][None]
           + params["type_emb"][token_type_ids])
    qkv = emb @ params["wqkv"]
    q, k, v = qkv[..., :H], qkv[..., H:2 * H], qkv[..., 2 * H:]
    scores = jnp.einsum("bqh,bkh->bqk", q, k) / math.sqrt(H)
    scores = scores + (attention_mask.astype(jnp.float32)[:, None, :] - 1.0) * 1e9
    attn = jnp.einsum("bqk,bkh->bqh", _softmax(scores, -1), v)
    h = _layernorm(emb + attn @ params["wo"])
    ff = jax.nn.gelu(h @ params["w1"] + params["b1"], approximate=True)
    h2 = _layernorm(h + ff @ params["w2"] + params["b2"])
    pool = jnp.tanh(h2[:, 0, :] @ params["w_pool"] + params["b_pool"])
    w = params["w_heads"][dataset_ids]                    # (B, H, DPAD)
    b = params["b_heads"][dataset_ids][:, 0, :]           # (B, DPAD)
    valid = params["head_valid"][dataset_ids][:, 0, :]    # (B, DPAD)
    logits = jnp.einsum("bh,bhd->bd", pool, w) + b
    logits = jnp.where(valid > 0.5, logits, NEG_FILL)
    return logits[:, :batch_max_labels]


# ------------------------------ main ------------------------------
if __name__ == "__main__":
    B, S, H, F, VOCAB = 4, 8, 32, 128, 64
    key = jax.random.PRNGKey(0)
    k_param, k_ids = jax.random.split(key)

    params = init_params(k_param, VOCAB, S, H, F)

    input_ids = jax.random.randint(k_ids, (B, S), 0, VOCAB, dtype=jnp.int32)
    lengths = jnp.array([8, 6, 5, 7], jnp.int32)
    attention_mask = (jnp.arange(S)[None, :] < lengths[:, None]).astype(jnp.int32)
    dataset_ids_list = [0, 2, 1, 0]                       # cola, mnli, stsb, cola
    dataset_ids = jnp.array(dataset_ids_list, jnp.int32)
    token_type_ids = jnp.zeros((B, S), jnp.int32)

    # Host-side static (torch: max(output_dims) over the batch) -- no device sync.
    batch_max = max(TASK_NUM_LABELS[REV_GLUE_DATA_ID_MAP[d]] for d in dataset_ids_list)

    out = multitask_forward(params, input_ids, attention_mask, dataset_ids,
                            token_type_ids=token_type_ids,
                            batch_max_labels=batch_max)
    logits = jax.block_until_ready(out["logits"])

    ref = reference_forward(params, input_ids, attention_mask, dataset_ids,
                            token_type_ids, batch_max)
    assert logits.shape == ref.shape == (B, 3), (logits.shape, ref.shape)
    # kernel uses bf16 matmul operands with f32 accumulation -> modest tolerance vs f32 ref
    assert jnp.allclose(logits, ref, atol=2e-2, rtol=2e-2), (logits, ref)

    print("KERNEL_OK")
</pallas_src>

<mosaic_0001>
module attributes {stable_mosaic.version = 11 : i64} {
  func.func @fused_kernel(%arg0: i32, %arg1: memref<4xi32, #tpu.memory_space<smem>>, %arg2: memref<1x8x32xf32, #tpu.memory_space<vmem>>, %arg3: memref<1x1x8xf32, #tpu.memory_space<vmem>>, %arg4: memref<8x32xf32, #tpu.memory_space<vmem>>, %arg5: memref<32x96xbf16, #tpu.memory_space<vmem>>, %arg6: memref<32x32xbf16, #tpu.memory_space<vmem>>, %arg7: memref<32x128xbf16, #tpu.memory_space<vmem>>, %arg8: memref<1x128xf32, #tpu.memory_space<vmem>>, %arg9: memref<128x32xbf16, #tpu.memory_space<vmem>>, %arg10: memref<1x32xf32, #tpu.memory_space<vmem>>, %arg11: memref<32x32xbf16, #tpu.memory_space<vmem>>, %arg12: memref<1x32xf32, #tpu.memory_space<vmem>>, %arg13: memref<1x32x128xbf16, #tpu.memory_space<vmem>>, %arg14: memref<1x1x128xf32, #tpu.memory_space<vmem>>, %arg15: memref<1x1x128xf32, #tpu.memory_space<vmem>>, %arg16: memref<1x1x128xf32, #tpu.memory_space<vmem>>) attributes {dimension_semantics = [#tpu.dimension_semantics<parallel>], iteration_bounds = array<i64: 4>, scalar_prefetch = 1 : i64, scratch_operands = 0 : i64, tpu.core_type = #tpu.core_type<tc>, window_params = [{transform_indices = @transform_0, window_bounds = array<i64: 1, 8, 32>}, {transform_indices = @transform_1, window_bounds = array<i64: 1, 1, 8>}, {pipeline_mode = #tpu.pipeline_mode<synchronous>, transform_indices = @transform_2, window_bounds = array<i64: 8, 32>}, {pipeline_mode = #tpu.pipeline_mode<synchronous>, transform_indices = @transform_3, window_bounds = array<i64: 32, 96>}, {pipeline_mode = #tpu.pipeline_mode<synchronous>, transform_indices = @transform_4, window_bounds = array<i64: 32, 32>}, {pipeline_mode = #tpu.pipeline_mode<synchronous>, transform_indices = @transform_5, window_bounds = array<i64: 32, 128>}, {pipeline_mode = #tpu.pipeline_mode<synchronous>, transform_indices = @transform_6, window_bounds = array<i64: 1, 128>}, {pipeline_mode = #tpu.pipeline_mode<synchronous>, transform_indices = @transform_7, window_bounds = array<i64: 128, 32>}, {pipeline_mode = #tpu.pipeline_mode<synchronous>, transform_indices = @transform_8, window_bounds = array<i64: 1, 32>}, {pipeline_mode = #tpu.pipeline_mode<synchronous>, transform_indices = @transform_9, window_bounds = array<i64: 32, 32>}, {pipeline_mode = #tpu.pipeline_mode<synchronous>, transform_indices = @transform_10, window_bounds = array<i64: 1, 32>}, {transform_indices = @transform_11, window_bounds = array<i64: 1, 32, 128>}, {transform_indices = @transform_12, window_bounds = array<i64: 1, 1, 128>}, {transform_indices = @transform_13, window_bounds = array<i64: 1, 1, 128>}, {transform_indices = @transform_14, window_bounds = array<i64: 1, 1, 128>}]} {
    %c0 = arith.constant 0 : index
    %c0_0 = arith.constant 0 : index
    %c0_1 = arith.constant 0 : index
    %0 = vector.load %arg2[%c0, %c0_0, %c0_1] : memref<1x8x32xf32, #tpu.memory_space<vmem>>, vector<1x8x32xf32>
    %1 = vector.shape_cast %0 : vector<1x8x32xf32> to vector<8x32xf32>
    %c0_2 = arith.constant 0 : index
    %c0_3 = arith.constant 0 : index
    %2 = vector.load %arg4[%c0_2, %c0_3] : memref<8x32xf32, #tpu.memory_space<vmem>>, vector<8x32xf32>
    %3 = arith.addf %1, %2 : vector<8x32xf32>
    %4 = arith.truncf %3 : vector<8x32xf32> to vector<8x32xbf16>
    %c0_4 = arith.constant 0 : index
    %c0_5 = arith.constant 0 : index
    %5 = vector.load %arg5[%c0_4, %c0_5] : memref<32x96xbf16, #tpu.memory_space<vmem>>, vector<32x96xbf16>
    %cst = arith.constant dense<0.000000e+00> : vector<8x96xf32>
    %6 = tpu.matmul %4, %5, %cst {dimension_numbers = #tpu.dot_dimension_numbers<[1], [0], [0], [1], [0, 0, 1, 1], [], []>} : vector<8x32xbf16>, vector<32x96xbf16>, vector<8x96xf32> -> vector<8x96xf32>
    %7 = vector.extract_strided_slice %6 {offsets = [0, 0], sizes = [8, 32], strides = [1, 1]} : vector<8x96xf32> to vector<8x32xf32>
    %8 = arith.truncf %7 : vector<8x32xf32> to vector<8x32xbf16>
    %9 = vector.extract_strided_slice %6 {offsets = [0, 32], sizes = [8, 32], strides = [1, 1]} : vector<8x96xf32> to vector<8x32xf32>
    %10 = arith.truncf %9 : vector<8x32xf32> to vector<8x32xbf16>
    %11 = vector.extract_strided_slice %6 {offsets = [0, 64], sizes = [8, 32], strides = [1, 1]} : vector<8x96xf32> to vector<8x32xf32>
    %12 = arith.truncf %11 : vector<8x32xf32> to vector<8x32xbf16>
    %cst_6 = arith.constant dense<0.000000e+00> : vector<8x8xf32>
    %13 = tpu.matmul %8, %10, %cst_6 {dimension_numbers = #tpu.dot_dimension_numbers<[1], [1], [0], [0], [0, 0, 1, 0], [], []>} : vector<8x32xbf16>, vector<8x32xbf16>, vector<8x8xf32> -> vector<8x8xf32>
    %cst_7 = arith.constant 0.176776692 : f32
    %14 = vector.broadcast %cst_7 : f32 to vector<8x8xf32>
    %15 = arith.mulf %13, %14 : vector<8x8xf32>
    %c0_8 = arith.constant 0 : index
    %c0_9 = arith.constant 0 : index
    %c0_10 = arith.constant 0 : index
    %16 = vector.load %arg3[%c0_8, %c0_9, %c0_10] : memref<1x1x8xf32, #tpu.memory_space<vmem>>, vector<1x1x8xf32>
    %17 = vector.shape_cast %16 : vector<1x1x8xf32> to vector<1x8xf32>
    %cst_11 = arith.constant 1.000000e+00 : f32
    %18 = vector.broadcast %cst_11 : f32 to vector<1x8xf32>
    %19 = arith.subf %17, %18 : vector<1x8xf32>
    %cst_12 = arith.constant 1.000000e+09 : f32
    %20 = vector.broadcast %cst_12 : f32 to vector<1x8xf32>
    %21 = arith.mulf %19, %20 : vector<1x8xf32>
    %22 = vector.broadcast %21 : vector<1x8xf32> to vector<8x8xf32>
    %23 = arith.addf %15, %22 : vector<8x8xf32>
    %cst_13 = arith.constant dense<0xFF800000> : vector<8xf32>
    %24 = vector.multi_reduction <maximumf>, %23, %cst_13 [1] : vector<8x8xf32> to vector<8xf32>
    %25 = vector.shape_cast %24 : vector<8xf32> to vector<8x1xf32>
    %26 = vector.broadcast %25 : vector<8x1xf32> to vector<8x8xf32>
    %27 = arith.subf %23, %26 : vector<8x8xf32>
    %28 = math.exp %27 : vector<8x8xf32>
    %cst_14 = arith.constant dense<0.000000e+00> : vector<8xf32>
    %29 = vector.multi_reduction <add>, %28, %cst_14 [1] : vector<8x8xf32> to vector<8xf32>
    %30 = vector.shape_cast %29 : vector<8xf32> to vector<8x1xf32>
    %31 = tpu.reciprocal %30 {approx = true} : vector<8x1xf32> -> vector<8x1xf32>
    %32 = vector.broadcast %31 : vector<8x1xf32> to vector<8x8xf32>
    %33 = arith.mulf %28, %32 : vector<8x8xf32>
    %34 = arith.truncf %33 : vector<8x8xf32> to vector<8x8xbf16>
    %cst_15 = arith.constant dense<0.000000e+00> : vector<8x32xf32>
    %35 = tpu.matmul %34, %12, %cst_15 {dimension_numbers = #tpu.dot_dimension_numbers<[1], [0], [0], [1], [0, 0, 1, 1], [], []>} : vector<8x8xbf16>, vector<8x32xbf16>, vector<8x32xf32> -> vector<8x32xf32>
    %36 = arith.truncf %35 : vector<8x32xf32> to vector<8x32xbf16>
    %c0_16 = arith.constant 0 : index
    %c0_17 = arith.constant 0 : index
    %37 = vector.load %arg6[%c0_16, %c0_17] : memref<32x32xbf16, #tpu.memory_space<vmem>>, vector<32x32xbf16>
    %cst_18 = arith.constant dense<0.000000e+00> : vector<8x32xf32>
    %38 = tpu.matmul %36, %37, %cst_18 {dimension_numbers = #tpu.dot_dimension_numbers<[1], [0], [0], [1], [0, 0, 1, 1], [], []>} : vector<8x32xbf16>, vector<32x32xbf16>, vector<8x32xf32> -> vector<8x32xf32>
    %39 = arith.addf %3, %38 : vector<8x32xf32>
    %cst_19 = arith.constant dense<0.000000e+00> : vector<8xf32>
    %40 = vector.multi_reduction <add>, %39, %cst_19 [1] : vector<8x32xf32> to vector<8xf32>
    %41 = vector.shape_cast %40 : vector<8xf32> to vector<8x1xf32>
    %cst_20 = arith.constant 3.200000e+01 : f32
    %42 = vector.broadcast %cst_20 : f32 to vector<8x1xf32>
    %43 = arith.divf %41, %42 : vector<8x1xf32>
    %44 = vector.broadcast %43 : vector<8x1xf32> to vector<8x32xf32>
    %45 = arith.subf %39, %44 : vector<8x32xf32>
    %46 = arith.mulf %45, %45 : vector<8x32xf32>
    %cst_21 = arith.constant dense<0.000000e+00> : vector<8xf32>
    %47 = vector.multi_reduction <add>, %46, %cst_21 [1] : vector<8x32xf32> to vector<8xf32>
    %48 = vector.shape_cast %47 : vector<8xf32> to vector<8x1xf32>
    %cst_22 = arith.constant 3.200000e+01 : f32
    %49 = vector.broadcast %cst_22 : f32 to vector<8x1xf32>
    %50 = arith.divf %48, %49 : vector<8x1xf32>
    %51 = vector.broadcast %43 : vector<8x1xf32> to vector<8x32xf32>
    %52 = arith.subf %39, %51 : vector<8x32xf32>
    %cst_23 = arith.constant 9.99999974E-6 : f32
    %53 = vector.broadcast %cst_23 : f32 to vector<8x1xf32>
    %54 = arith.addf %50, %53 : vector<8x1xf32>
    %55 = math.rsqrt %54 : vector<8x1xf32>
    %56 = vector.broadcast %55 : vector<8x1xf32> to vector<8x32xf32>
    %57 = arith.mulf %52, %56 : vector<8x32xf32>
    %58 = arith.truncf %57 : vector<8x32xf32> to vector<8x32xbf16>
    %c0_24 = arith.constant 0 : index
    %c0_25 = arith.constant 0 : index
    %59 = vector.load %arg7[%c0_24, %c0_25] : memref<32x128xbf16, #tpu.memory_space<vmem>>, vector<32x128xbf16>
    %cst_26 = arith.constant dense<0.000000e+00> : vector<8x128xf32>
    %60 = tpu.matmul %58, %59, %cst_26 {dimension_numbers = #tpu.dot_dimension_numbers<[1], [0], [0], [1], [0, 0, 1, 1], [], []>} : vector<8x32xbf16>, vector<32x128xbf16>, vector<8x128xf32> -> vector<8x128xf32>
    %c0_27 = arith.constant 0 : index
    %c0_28 = arith.constant 0 : index
    %61 = vector.load %arg8[%c0_27, %c0_28] : memref<1x128xf32, #tpu.memory_space<vmem>>, vector<1x128xf32>
    %62 = vector.broadcast %61 : vector<1x128xf32> to vector<8x128xf32>
    %63 = arith.addf %60, %62 : vector<8x128xf32>
    %64 = arith.mulf %63, %63 : vector<8x128xf32>
    %65 = arith.mulf %63, %64 : vector<8x128xf32>
    %cst_29 = arith.constant 4.471500e-02 : f32
    %66 = vector.broadcast %cst_29 : f32 to vector<8x128xf32>
    %67 = arith.mulf %66, %65 : vector<8x128xf32>
    %68 = arith.addf %63, %67 : vector<8x128xf32>
    %cst_30 = arith.constant 0.797884583 : f32
    %69 = vector.broadcast %cst_30 : f32 to vector<8x128xf32>
    %70 = arith.mulf %69, %68 : vector<8x128xf32>
    %71 = math.tanh %70 : vector<8x128xf32>
    %cst_31 = arith.constant 1.000000e+00 : f32
    %72 = vector.broadcast %cst_31 : f32 to vector<8x128xf32>
    %73 = arith.addf %72, %71 : vector<8x128xf32>
    %cst_32 = arith.constant 5.000000e-01 : f32
    %74 = vector.broadcast %cst_32 : f32 to vector<8x128xf32>
    %75 = arith.mulf %74, %73 : vector<8x128xf32>
    %76 = arith.mulf %63, %75 : vector<8x128xf32>
    %77 = arith.truncf %76 : vector<8x128xf32> to vector<8x128xbf16>
    %c0_33 = arith.constant 0 : index
    %c0_34 = arith.constant 0 : index
    %78 = vector.load %arg9[%c0_33, %c0_34] : memref<128x32xbf16, #tpu.memory_space<vmem>>, vector<128x32xbf16>
    %cst_35 = arith.constant dense<0.000000e+00> : vector<8x32xf32>
    %79 = tpu.matmul %77, %78, %cst_35 {dimension_numbers = #tpu.dot_dimension_numbers<[1], [0], [0], [1], [0, 0, 1, 1], [], []>} : vector<8x128xbf16>, vector<128x32xbf16>, vector<8x32xf32> -> vector<8x32xf32>
    %80 = arith.addf %57, %79 : vector<8x32xf32>
    %c0_36 = arith.constant 0 : index
    %c0_37 = arith.constant 0 : index
    %81 = vector.load %arg10[%c0_36, %c0_37] : memref<1x32xf32, #tpu.memory_space<vmem>>, vector<1x32xf32>
    %82 = vector.broadcast %81 : vector<1x32xf32> to vector<8x32xf32>
    %83 = arith.addf %80, %82 : vector<8x32xf32>
    %cst_38 = arith.constant dense<0.000000e+00> : vector<8xf32>
    %84 = vector.multi_reduction <add>, %83, %cst_38 [1] : vector<8x32xf32> to vector<8xf32>
    %85 = vector.shape_cast %84 : vector<8xf32> to vector<8x1xf32>
    %cst_39 = arith.constant 3.200000e+01 : f32
    %86 = vector.broadcast %cst_39 : f32 to vector<8x1xf32>
    %87 = arith.divf %85, %86 : vector<8x1xf32>
    %88 = vector.broadcast %87 : vector<8x1xf32> to vector<8x32xf32>
    %89 = arith.subf %83, %88 : vector<8x32xf32>
    %90 = arith.mulf %89, %89 : vector<8x32xf32>
    %cst_40 = arith.constant dense<0.000000e+00> : vector<8xf32>
    %91 = vector.multi_reduction <add>, %90, %cst_40 [1] : vector<8x32xf32> to vector<8xf32>
    %92 = vector.shape_cast %91 : vector<8xf32> to vector<8x1xf32>
    %cst_41 = arith.constant 3.200000e+01 : f32
    %93 = vector.broadcast %cst_41 : f32 to vector<8x1xf32>
    %94 = arith.divf %92, %93 : vector<8x1xf32>
    %95 = vector.broadcast %87 : vector<8x1xf32> to vector<8x32xf32>
    %96 = arith.subf %83, %95 : vector<8x32xf32>
    %cst_42 = arith.constant 9.99999974E-6 : f32
    %97 = vector.broadcast %cst_42 : f32 to vector<8x1xf32>
    %98 = arith.addf %94, %97 : vector<8x1xf32>
    %99 = math.rsqrt %98 : vector<8x1xf32>
    %100 = vector.broadcast %99 : vector<8x1xf32> to vector<8x32xf32>
    %101 = arith.mulf %96, %100 : vector<8x32xf32>
    %102 = vector.extract_strided_slice %101 {offsets = [0, 0], sizes = [1, 32], strides = [1, 1]} : vector<8x32xf32> to vector<1x32xf32>
    %103 = arith.truncf %102 : vector<1x32xf32> to vector<1x32xbf16>
    %c0_43 = arith.constant 0 : index
    %c0_44 = arith.constant 0 : index
    %104 = vector.load %arg11[%c0_43, %c0_44] : memref<32x32xbf16, #tpu.memory_space<vmem>>, vector<32x32xbf16>
    %cst_45 = arith.constant dense<0.000000e+00> : vector<1x32xf32>
    %105 = tpu.matmul %103, %104, %cst_45 {dimension_numbers = #tpu.dot_dimension_numbers<[1], [0], [0], [1], [0, 0, 1, 1], [], []>} : vector<1x32xbf16>, vector<32x32xbf16>, vector<1x32xf32> -> vector<1x32xf32>
    %c0_46 = arith.constant 0 : index
    %c0_47 = arith.constant 0 : index
    %106 = vector.load %arg12[%c0_46, %c0_47] : memref<1x32xf32, #tpu.memory_space<vmem>>, vector<1x32xf32>
    %107 = arith.addf %105, %106 : vector<1x32xf32>
    %108 = math.tanh %107 : vector<1x32xf32>
    %109 = arith.truncf %108 : vector<1x32xf32> to vector<1x32xbf16>
    %c0_48 = arith.constant 0 : index
    %c0_49 = arith.constant 0 : index
    %c0_50 = arith.constant 0 : index
    %110 = vector.load %arg13[%c0_48, %c0_49, %c0_50] : memref<1x32x128xbf16, #tpu.memory_space<vmem>>, vector<1x32x128xbf16>
    %111 = vector.shape_cast %110 : vector<1x32x128xbf16> to vector<32x128xbf16>
    %cst_51 = arith.constant dense<0.000000e+00> : vector<1x128xf32>
    %112 = tpu.matmul %109, %111, %cst_51 {dimension_numbers = #tpu.dot_dimension_numbers<[1], [0], [0], [1], [0, 0, 1, 1], [], []>} : vector<1x32xbf16>, vector<32x128xbf16>, vector<1x128xf32> -> vector<1x128xf32>
    %c0_52 = arith.constant 0 : index
    %c0_53 = arith.constant 0 : index
    %c0_54 = arith.constant 0 : index
    %113 = vector.load %arg14[%c0_52, %c0_53, %c0_54] : memref<1x1x128xf32, #tpu.memory_space<vmem>>, vector<1x1x128xf32>
    %114 = vector.shape_cast %113 : vector<1x1x128xf32> to vector<1x128xf32>
    %115 = arith.addf %112, %114 : vector<1x128xf32>
    %c0_55 = arith.constant 0 : index
    %c0_56 = arith.constant 0 : index
    %c0_57 = arith.constant 0 : index
    %116 = vector.load %arg15[%c0_55, %c0_56, %c0_57] : memref<1x1x128xf32, #tpu.memory_space<vmem>>, vector<1x1x128xf32>
    %117 = vector.shape_cast %116 : vector<1x1x128xf32> to vector<1x128xf32>
    %cst_58 = arith.constant 5.000000e-01 : f32
    %118 = vector.broadcast %cst_58 : f32 to vector<1x128xf32>
    %119 = arith.cmpf ogt, %117, %118 : vector<1x128xf32>
    %cst_59 = arith.constant -1.000000e+03 : f32
    %120 = vector.broadcast %cst_59 : f32 to vector<1x128xf32>
    %121 = arith.select %119, %115, %120 : vector<1x128xi1>, vector<1x128xf32>
    %c0_60 = arith.constant 0 : index
    %c0_61 = arith.constant 0 : index
    %c0_62 = arith.constant 0 : index
    %122 = vector.load %arg16[%c0_60, %c0_61, %c0_62] : memref<1x1x128xf32, #tpu.memory_space<vmem>>, vector<1x1x128xf32>
    %123 = vector.shape_cast %122 : vector<1x1x128xf32> to vector<1x128xf32>
    %124 = vector.shape_cast %121 : vector<1x128xf32> to vector<1x1x128xf32>
    tpu.vector_store %arg16[%c0_60, %c0_61, %c0_62], %124 {strides = array<i32>} : memref<1x1x128xf32, #tpu.memory_space<vmem>>, vector<1x1x128xf32>,
    return
  }
  func.func @transform_0(%arg0: i32, %arg1: memref<4xi32, #tpu.memory_space<smem>>) -> (i32, i32, i32) {
    %c0_i32 = arith.constant 0 : i32
    %c0_i32_0 = arith.constant 0 : i32
    %c0_i32_1 = arith.constant 0 : i32
    return %arg0, %c0_i32, %c0_i32_0 : i32, i32, i32
  }
  func.func @transform_1(%arg0: i32, %arg1: memref<4xi32, #tpu.memory_space<smem>>) -> (i32, i32, i32) {
    %c0_i32 = arith.constant 0 : i32
    %c0_i32_0 = arith.constant 0 : i32
    %c0_i32_1 = arith.constant 0 : i32
    return %arg0, %c0_i32, %c0_i32_0 : i32, i32, i32
  }
  func.func @transform_2(%arg0: i32, %arg1: memref<4xi32, #tpu.memory_space<smem>>) -> (i32, i32) {
    %c0_i32 = arith.constant 0 : i32
    %c0_i32_0 = arith.constant 0 : i32
    %c0_i32_1 = arith.constant 0 : i32
    return %c0_i32, %c0_i32_0 : i32, i32
  }
  func.func @transform_3(%arg0: i32, %arg1: memref<4xi32, #tpu.memory_space<smem>>) -> (i32, i32) {
    %c0_i32 = arith.constant 0 : i32
    %c0_i32_0 = arith.constant 0 : i32
    %c0_i32_1 = arith.constant 0 : i32
    return %c0_i32, %c0_i32_0 : i32, i32
  }
  func.func @transform_4(%arg0: i32, %arg1: memref<4xi32, #tpu.memory_space<smem>>) -> (i32, i32) {
    %c0_i32 = arith.constant 0 : i32
    %c0_i32_0 = arith.constant 0 : i32
    %c0_i32_1 = arith.constant 0 : i32
    return %c0_i32, %c0_i32_0 : i32, i32
  }
  func.func @transform_5(%arg0: i32, %arg1: memref<4xi32, #tpu.memory_space<smem>>) -> (i32, i32) {
    %c0_i32 = arith.constant 0 : i32
    %c0_i32_0 = arith.constant 0 : i32
    %c0_i32_1 = arith.constant 0 : i32
    return %c0_i32, %c0_i32_0 : i32, i32
  }
  func.func @transform_6(%arg0: i32, %arg1: memref<4xi32, #tpu.memory_space<smem>>) -> (i32, i32) {
    %c0_i32 = arith.constant 0 : i32
    %c0_i32_0 = arith.constant 0 : i32
    %c0_i32_1 = arith.constant 0 : i32
    return %c0_i32, %c0_i32_0 : i32, i32
  }
  func.func @transform_7(%arg0: i32, %arg1: memref<4xi32, #tpu.memory_space<smem>>) -> (i32, i32) {
    %c0_i32 = arith.constant 0 : i32
    %c0_i32_0 = arith.constant 0 : i32
    %c0_i32_1 = arith.constant 0 : i32
    return %c0_i32, %c0_i32_0 : i32, i32
  }
  func.func @transform_8(%arg0: i32, %arg1: memref<4xi32, #tpu.memory_space<smem>>) -> (i32, i32) {
    %c0_i32 = arith.constant 0 : i32
    %c0_i32_0 = arith.constant 0 : i32
    %c0_i32_1 = arith.constant 0 : i32
    return %c0_i32, %c0_i32_0 : i32, i32
  }
  func.func @transform_9(%arg0: i32, %arg1: memref<4xi32, #tpu.memory_space<smem>>) -> (i32, i32) {
    %c0_i32 = arith.constant 0 : i32
    %c0_i32_0 = arith.constant 0 : i32
    %c0_i32_1 = arith.constant 0 : i32
    return %c0_i32, %c0_i32_0 : i32, i32
  }
  func.func @transform_10(%arg0: i32, %arg1: memref<4xi32, #tpu.memory_space<smem>>) -> (i32, i32) {
    %c0_i32 = arith.constant 0 : i32
    %c0_i32_0 = arith.constant 0 : i32
    %c0_i32_1 = arith.constant 0 : i32
    return %c0_i32, %c0_i32_0 : i32, i32
  }
  func.func @transform_11(%arg0: i32, %arg1: memref<4xi32, #tpu.memory_space<smem>>) -> (i32, i32, i32) {
    %0 = arith.index_cast %arg0 : i32 to index
    %1 = memref.load %arg1[%0] : memref<4xi32, #tpu.memory_space<smem>>
    %c0_i32 = arith.constant 0 : i32
    %c0_i32_0 = arith.constant 0 : i32
    %c0_i32_1 = arith.constant 0 : i32
    return %1, %c0_i32, %c0_i32_0 : i32, i32, i32
  }
  func.func @transform_12(%arg0: i32, %arg1: memref<4xi32, #tpu.memory_space<smem>>) -> (i32, i32, i32) {
    %0 = arith.index_cast %arg0 : i32 to index
    %1 = memref.load %arg1[%0] : memref<4xi32, #tpu.memory_space<smem>>
    %c0_i32 = arith.constant 0 : i32
    %c0_i32_0 = arith.constant 0 : i32
    %c0_i32_1 = arith.constant 0 : i32
    return %1, %c0_i32, %c0_i32_0 : i32, i32, i32
  }
  func.func @transform_13(%arg0: i32, %arg1: memref<4xi32, #tpu.memory_space<smem>>) -> (i32, i32, i32) {
    %0 = arith.index_cast %arg0 : i32 to index
    %1 = memref.load %arg1[%0] : memref<4xi32, #tpu.memory_space<smem>>
    %c0_i32 = arith.constant 0 : i32
    %c0_i32_0 = arith.constant 0 : i32
    %c0_i32_1 = arith.constant 0 : i32
    return %1, %c0_i32, %c0_i32_0 : i32, i32, i32
  }
  func.func @transform_14(%arg0: i32, %arg1: memref<4xi32, #tpu.memory_space<smem>>) -> (i32, i32, i32) {
    %c0_i32 = arith.constant 0 : i32
    %c0_i32_0 = arith.constant 0 : i32
    %c0_i32_1 = arith.constant 0 : i32
    return %arg0, %c0_i32, %c0_i32_0 : i32, i32, i32
  }
}

</mosaic_0001>

<bundles_post_ra>
// kernel: tpu_custom_call.1
= control target key start
LH: loop header
LB: loop body
LE: loop exit
PB: predicated region body
PF: predicated region fallthrough
CT: control target
= control target key end

     0   :  { %s1973_s21 = smov [#allocation3]   ;;  %s2419_s0 = inlined_call_operand.hbm [shape: s32[4], index: 0, kind: input, shape index: {}]   ;;  %s2420_s1 = inlined_call_operand.vmem [shape: f32[4,8,32], index: 1, kind: input, shape index: {}]   ;;  %s2421_s2 = inlined_call_operand.hbm [shape: f32[4,1,8], index: 2, kind: input, shape index: {}]   ;;  %s2422_s3 = inlined_call_operand.vmem [shape: f32[8,32], index: 3, kind: input, shape index: {}]   ;;  %s2423_s4 = inlined_call_operand.hbm [shape: bf16[32,96], index: 4, kind: input, shape index: {}]   ;;  %s2424_s5 = inlined_call_operand.hbm [shape: bf16[32,32], index: 5, kind: input, shape index: {}]   ;;  %s2425_s6 = inlined_call_operand.hbm [shape: bf16[32,128], index: 6, kind: input, shape index: {}]   ;;  %s2426_s7 = inlined_call_operand.hbm [shape: f32[1,128], index: 7, kind: input, shape index: {}]   ;;  %s2427_s8 = inlined_call_operand.vmem [shape: bf16[128,32], index: 8, kind: input, shape index: {}]   ;;  %s2428_s9 = inlined_call_operand.hbm [shape: f32[1,32], index: 9, kind: input, shape index: {}]   ;;  %s2429_s10 = inlined_call_operand.hbm [shape: bf16[32,32], index: 10, kind: input, shape index: {}]   ;;  %s2430_s11 = inlined_call_operand.hbm [shape: f32[1,32], index: 11, kind: input, shape index: {}]   ;;  %s2431_s12 = inlined_call_operand.vmem [shape: bf16[3,32,128], index: 12, kind: input, shape index: {}]   ;;  %s2432_s13 = inlined_call_operand.vmem [shape: f32[3,1,128], index: 13, kind: input, shape index: {}]   ;;  %s2433_s14 = inlined_call_operand.hbm [shape: f32[3,1,128], index: 14, kind: input, shape index: {}]   ;;  %s2434_s15 = inlined_call_operand.hbm [shape: f32[4,1,128], index: 15, kind: output, shape index: {}]  }
   0x1   :  { %2451 = sst [smem:[#allocation36_spill]] %s2420_s1  ;;  %s21_s20 = sshll.u32 %s2419_s0, 4  ;;  %s22_s20 = int_to_ptr.hbm [resolvable:$true] %s21_s20 }
   0x2   :  { %2452 = sst [smem:[#allocation37_spill]] %s2422_s3 }
   0x3   :  { %2453 = sst [smem:[#allocation38_spill]] %s2423_s4 }
   0x4   :  { %2454 = sst [smem:[#allocation39_spill]] %s2425_s6 }
   0x5   :  { %2455 = sst [smem:[#allocation40_spill]] %s2427_s8 }
   0x6   :  { %2456 = sst [smem:[#allocation41_spill]] %s2428_s9 }
   0x7   :  { %2457 = sst [smem:[#allocation42_spill]] %s2431_s12 }
   0x8   :  { %2458 = sst [smem:[#allocation43_spill]] %s2432_s13 }
   0x9   :  { %2459 = sst [smem:[#allocation44_spill]] %s2434_s15 }
   0xa   :  { %24 = dma.hbm_to_smem %s22_s20, 16, %s1973_s21, [#allocation2] }
   0xb   :  { %1915 = dma.done.wait [#allocation2], 16 }
   0xc   :  { %1916 = vsyncadd [#allocation2], 4294967280 }
   0xd   :  { %27 = sfence }
   0xe   :  { %28 = vsyncpa [#allocation5], 0 }
   0xf   :  { %30 = vsyncpa [#allocation5 + $0x1], 0 }
  0x10   :  { %31 = vsyncpa [#allocation8], 0 }
  0x11   :  { %32 = vsyncpa [#allocation11], 0 }
  0x12   :  { %33 = vsyncpa [#allocation14], 0 }
  0x13   :  { %34 = vsyncpa [#allocation17], 0 }
  0x14   :  { %35 = vsyncpa [#allocation6], 0 }
  0x15   :  { %37 = vsyncpa [#allocation6 + $0x1], 0  ;;  %s2069_s22 = smov 0   ;;  %s2071_s23 = smov 0  }
  0x16   :  { %s2073_s24 = smov 0   ;;  %s2075_s0 = smov 0  }
  0x17   :  { %s2077_s25 = smov 0   ;;  %s2079_s26 = smov 0  }
  0x18   :  { %s2081_s27 = smov 0  }
  0x19 LB: > { %2460 = sst [smem:[#allocation30_spill]] %s1959_s0  ;;  %s2108_s16 = sadd.s32 4294967295, %s1971_s27   ;;  %s1971_s27 = sphi %s2081_s27, %s2503_s27   ;;  %s1967_s26 = sphi %s2079_s26, %s2505_s26   ;;  %s1963_s25 = sphi %s2077_s25, %s2510_s25   ;;  %s1959_s0 = sphi %s2075_s0, %s2509_s0   ;;  %s1955_s24 = sphi %s2073_s24, %s2508_s24   ;;  %s1951_s23 = sphi %s2071_s23, %s2507_s23   ;;  %s1947_s22 = sphi %s2069_s22, %s2506_s22  }
  0x1a   : > { %2461 = sst [smem:[#allocation31_spill]] %s1967_s26  ;;  %p1284_p0 = scmp.ge.s32.totalorder %s1971_s27, 1 }
  0x1b   : > { %s2462_s4 = sld [smem:[#allocation38_spill]]  ;;  %p2449_p1 = scmp.eq.s32.totalorder %s2108_s16, 0 }
  0x1c   : > { %p399_p2 = scmp.lt.s32.totalorder %s1971_s27, 5  ;;  %s1974_s18 = smov [#allocation7]  }
  0x1d   : > { %s415_s19 = sshll.u32 %s1974_s18, 4  ;;  %s2464_s6 = sld [smem:[#allocation39_spill]]  ;;  %s416_s19 = int_to_ptr.vmem [resolvable:$true] %s415_s19 }
  0x1e   : > { %p2113_p3 = pnand %p1284_p0, %p399_p2  ;;  %s2466_s9 = sld [smem:[#allocation41_spill]] }
  0x1f   : > { %s1975_s13 = smov [#allocation10]   ;;  %s2436_s21 = smov 64  }
  0x20   : > { %p1441_p4 = pneg %p2113_p3  ;;  %s443_s20 = sshll.u32 %s1975_s13, 4  ;;  %s444_s20 = int_to_ptr.vmem [resolvable:$true] %s443_s20 }
  0x21   : > { %s413_s30 = sshll.u32 %s2462_s4, 4  ;;  %s1978_s4 = smov [#allocation13]   ;;  %s414_s30 = int_to_ptr.hbm [resolvable:$true] %s413_s30 }
  0x22   : > { %p2124_p5 = pnand %p1441_p4, %p2449_p1  ;;  %s473_s13 = sshll.u32 %s1978_s4, 4  ;;  %s474_s13 = int_to_ptr.vmem [resolvable:$true] %s473_s13 }
  0x23   : > { %s441_s28 = sshll.u32 %s2464_s6, 4  ;;  %s2438_s6 = smov 4   ;;  %s442_s28 = int_to_ptr.hbm [resolvable:$true] %s441_s28 }
  0x24   : > { %s471_s15 = sshll.u32 %s2466_s9, 4  ;;  %s1283_s18 = sadd.s32 4294967294, %s1971_s27   ;;  %s472_s15 = int_to_ptr.hbm [resolvable:$true] %s471_s15 }
  0x25   : > { %1444 = dma.hbm_to_vmem [thread:$0]  (!%p2124_p5), %s414_s30, 256, %s416_s19, [#allocation8], %s2436_s21, %s2436_s21, %s2438_s6  }
  0x26   : > { %1450 = dma.hbm_to_vmem [thread:$0]  (!%p2124_p5), %s442_s28, 256, %s444_s20, [#allocation11], %s2436_s21, %s2436_s21, %s2438_s6  }
  0x27   : > { %1456 = dma.hbm_to_vmem [thread:$0]  (!%p2124_p5), %s472_s15, 16, %s474_s13, [#allocation14]  }
  0x28   : > { %s2145_s30 = sadd.s32 1, %s1971_s27   ;;  %s76_s19 = sadd.s32 1, %s1967_s26 }
  0x29   : > { %2467 = sst [smem:[#allocation32_spill]] %s2145_s30  ;;  %s73_s9 = ssub.s32 %s1971_s27, %s2145_s30 }
  0x2a   : > { %p83_p6 = scmp.ne.s32.totalorder %s1967_s26, %s1963_s25  ;;  %p74_p7 = scmp.eq.s32.totalorder %s73_s9, 0 }
  0x2b   : > { %p2450_p8 = scmp.eq.s32.totalorder %s1971_s27, 0  ;;  %p89_p9 = scmp.ne.s32.totalorder %s1963_s25, %s1959_s0 }
  0x2c   : > { %s2156_s28 = sld [smem:[#allocation3 + %s2145_s30]]  ;;  %p386_p12 = scmp.eq.s32.totalorder %s2108_s16, 3 }
  0x2d   : > { %s2159_s20 = scalar_select %p74_p7, %s1967_s26, %s76_s19  }
  0x2e   : > { %p2163_p10 = por %p2450_p8, %p83_p6  ;;  %p2169_p11 = por %p2449_p1, %p89_p9 }
  0x2f   : > { %2468 = sst [smem:[#allocation33_spill]] %s2159_s20  ;;  %p392_p13 = scmp.eq.s32.totalorder %s1283_s18, 3 }
  0x30   : > { %p2448_p0 = scmp.lt.s32.totalorder %s1971_s27, 4  ;;  %s517_s9 = sand.u32 1, %s1971_s27  }
  0x31   : > { %p2176_p2 = por %p386_p12, %p83_p6  ;;  %p2180_p4 = por %p392_p13, %p89_p9 }
  0x32   : > { %s519_s21 = sand.u32 1, %s1967_s26   ;;  %s523_s30 = scalar_lea.hbm %s2421_s2, %s1971_s27 }
  0x33   : > { %s2471_s13 = scalar_select %p2176_p2, 1, 0 }
  0x34   : > { %s2473_s19 = scalar_select %p2180_p4, 1, 0 }
  0x35   : > { %2472 = sst [smem:[#allocation34_spill]] %s2471_s13  ;;  %s525_s0 = sshll.u32 %s523_s30, 4  ;;  %s526_s0 = int_to_ptr.hbm [resolvable:$true] %s525_s0 }
  0x36   : > { %2474 = sst [smem:[#allocation35_spill]] %s2473_s19  ;;  %s520_s12 = scalar_lea.vmem [#allocation4], %s519_s21 }
  0x37   : > { %s527_s8 = sshll.u32 %s520_s12, 4  ;;  %p2193_p6 = pnand %p2448_p0, %p2163_p10  ;;  %s528_s8 = int_to_ptr.vmem [resolvable:$true] %s527_s8 }
  0x38   : > { %s427_s26 = sshll.u32 %s2424_s5, 4  ;;  %s1979_s19 = smov [#allocation9]   ;;  %s428_s26 = int_to_ptr.hbm [resolvable:$true] %s427_s26 }
  0x39   : > { %s429_s6 = sshll.u32 %s1979_s19, 4  ;;  %s2200_s20 = scalar_lea.sflag [#allocation5], %s517_s9  ;;  %s430_s6 = int_to_ptr.vmem [resolvable:$true] %s429_s6 }
  0x3a   : > { %s1679_s21 = sshra.s32 %s526_s0, 4  ;;  %p1683_p9 = pneg %p2193_p6  ;;  %s1680_s21 = int_to_ptr.hbm [resolvable:$true] %s1679_s21 }
  0x3b   : > { %s1681_s12 = scalar_lea.hbm %s1680_s21, 1  ;;  %s1686_s1 = scalar_lea.hbm %s2421_s2, 4 }
  0x3c   : > { %p1682_p7 = scmp.ne.s32.totalorder %s1680_s21, %s1681_s12  ;;  %p1687_p13 = scmp.lt.s32.totalorder %s1680_s21, %s2421_s2 }
  0x3d   : > { %p1688_p0 = scmp.lt.s32.totalorder %s1686_s1, %s1681_s12 }
  0x3e   : > { %p1684_p10 = pnand %p1683_p9, %p1682_p7 }
  0x3f   : > { %p1689_p1 = por %p1688_p0, %p1687_p13 }
  0x40   : > { %p1685_p12 = pneg %p1684_p10 }
  0x42   : > { %p1690_p8 = pnand %p1689_p1, %p1685_p12 }
  0x44   : > { %1693 = shalt.err (!%p1690_p8)
}
  0x45   : > { %1466 = dma.hbm_to_vmem [thread:$0]  (!%p2193_p6), %s526_s0, 16, %s528_s8, %s2200_s20  }
  0x46   : > { %s456_s30 = sshll.u32 %s2426_s7, 4  ;;  %s2476_s15 = smov 4   ;;  %s457_s30 = int_to_ptr.hbm [resolvable:$true] %s456_s30 }
  0x47   : > { %s2477_s3 = smov 64   ;;  %s1980_s1 = smov [#allocation12]  }
  0x48   : > { %1447 = dma.hbm_to_vmem [thread:$0]  (!%p2124_p5), %s428_s26, 256, %s430_s6, [#allocation8], %s2477_s3, %s2477_s3, %s2476_s15  }
  0x49   : > { %s458_s18 = sshll.u32 %s1980_s1, 4  ;;  %s482_s8 = sshll.u32 %s2429_s10, 4  ;;  %s459_s18 = int_to_ptr.vmem [resolvable:$true] %s458_s18  ;;  %s483_s8 = int_to_ptr.hbm [resolvable:$true] %s482_s8 }
  0x4a   : > { %1453 = dma.hbm_to_vmem [thread:$0]  (!%p2124_p5), %s457_s30, 16, %s459_s18, [#allocation11]  }
  0x4b   : > { %s497_s6 = sshll.u32 %s2430_s11, 4  ;;  %s1981_s13 = smov [#allocation15]   ;;  %s498_s6 = int_to_ptr.hbm [resolvable:$true] %s497_s6 }
  0x4c   : > { %s484_s9 = sshll.u32 %s1981_s13, 4  ;;  %s1982_s19 = smov [#allocation16]   ;;  %s485_s9 = int_to_ptr.vmem [resolvable:$true] %s484_s9 }
  0x4d   : > { %1459 = dma.hbm_to_vmem [thread:$0]  (!%p2124_p5), %s483_s8, 256, %s485_s9, [#allocation14], %s2477_s3, %s2477_s3, %s2476_s15  }
  0x4e   : > { %s499_s30 = sshll.u32 %s1982_s19, 4  ;;  %s344_s1 = sld [smem:[#allocation3 + %s1971_s27]]  ;;  %s500_s30 = int_to_ptr.vmem [resolvable:$true] %s499_s30 }
  0x4f   : > { %1462 = dma.hbm_to_vmem [thread:$0]  (!%p2124_p5), %s498_s6, 16, %s500_s30, [#allocation17]  }
  0x50   : > { %p356_p1 = scmp.ne.s32.totalorder %s1955_s24, %s1951_s23  ;;  %p362_p8 = scmp.ne.s32.totalorder %s1951_s23, %s1947_s22 }
  0x51   : > { %p2478_p0 = scmp.eq.s32.totalorder %s1971_s27, 0  ;;  %p2479_p7 = scmp.eq.s32.totalorder %s2108_s16, 0 }
  0x52   : > { %s349_s21 = sadd.s32 1, %s1955_s24  ;;  %s554_s12 = sand.u32 1, %s1955_s24  }
  0x53   : > { %p358_p6 = por %p356_p1, %p2478_p0  ;;  %p2245_p9 = por %p362_p8, %p2479_p7 }
  0x54   : > { %s346_s3 = ssub.s32 %s344_s1, %s2156_s28  ;;  %p2481_p12 = scmp.lt.s32.totalorder %s1971_s27, 4 }
  0x55   : > { %s1420_s15 = scalar_select %p358_p6, [#allocation3], [#allocation20] }
  0x56   : > { %p347_p10 = scmp.eq.s32.totalorder %s346_s3, 0  ;;  %p2482_p5 = pmov %p2481_p12 }
  0x57   : > { %s1421_s8 = scalar_select %p358_p6, %s1971_s27, 0 }
  0x58   : > { %s2254_s0 = scalar_select %p347_p10, %s1955_s24, %s349_s21  }
  0x59   : > { %s2512_s15 = smov (!%p2481_p12, %s1420_s15), [#allocation21]  ;;  %s2514_s8 = smov (!%p2482_p5, %s1421_s8), 0 }
  0x5a   : > { %p2483_p13 = pmov %p2482_p5  ;;  %s556_s29 = sld [smem:[%s2512_s15 + %s2514_s8]] }
  0x5b   : > { %s555_s26 = scalar_lea.vmem [#allocation18], %s554_s12  ;;  %s1836_s15 = scalar_lea.hbm %s2433_s14, 3 }
  0x5c   : > { %p2262_p4 = pnand %p2483_p13, %p358_p6  ;;  %s563_s6 = sshll.u32 %s555_s26, 4  ;;  %s564_s6 = int_to_ptr.vmem [resolvable:$true] %s563_s6 }
  0x5e   : > { %p1833_p8 = pneg %p2262_p4 }
  0x60   : > { %s559_s9 = scalar_lea.hbm %s2433_s14, %s556_s29 }
  0x61   : > { %s561_s19 = sshll.u32 %s559_s9, 4  ;;  %s562_s19 = int_to_ptr.hbm [resolvable:$true] %s561_s19 }
  0x62   : > { %s1829_s30 = sshra.s32 %s562_s19, 4  ;;  %s1830_s30 = int_to_ptr.hbm [resolvable:$true] %s1829_s30 }
  0x63   : > { %s1831_s1 = scalar_lea.hbm %s1830_s30, 1  ;;  %p1837_p7 = scmp.lt.s32.totalorder %s1830_s30, %s2433_s14 }
  0x64   : > { %p1832_p1 = scmp.ne.s32.totalorder %s1830_s30, %s1831_s1  ;;  %p1838_p10 = scmp.lt.s32.totalorder %s1836_s15, %s1831_s1 }
  0x66   : > { %p1834_p0 = pnand %p1833_p8, %p1832_p1  ;;  %p1839_p12 = por %p1838_p10, %p1837_p7 }
  0x68   : > { %p1835_p6 = pneg %p1834_p0 }
  0x6a   : > { %p1840_p5 = pnand %p1839_p12, %p1835_p6 }
  0x6c   : > { %1843 = shalt.err (!%p1840_p5)
}
  0x6d   : > { %1471 = dma.hbm_to_vmem [thread:$0]  (!%p2262_p4), %s562_s19, 16, %s564_s6, %s2200_s20  }
  0x6e   : > { %572 = sbr.rel (%p2113_p3) target bundleno = 2166 (0x876), region = 76  ;;  %s574_s29 = sand.u32 (!%p2113_p3), 1, %s2108_s16  }
  0x6f   : > { %s2284_s26 = sand.u32 (!%p2113_p3), 1, %s1963_s25   ;;  %s575_s28 = scalar_lea.sflag (!%p2113_p3), [#allocation5], %s574_s29 }
  0x70   : > { %s577_s13 = scalar_lea.vmem (!%p2113_p3), [#allocation4], %s2284_s26 }
  0x73   : > { %1918 = dma.done.wait (%p2169_p11), %s575_s28, 16  }
  0x74   : > { %1920 = vsyncadd (%p2169_p11), %s575_s28, 4294967280  ;;  %p2485_p13 = scmp.eq.s32.totalorder %s2108_s16, 0 }
  0x76   : > { %1922 = dma.done.wait (%p2485_p13), [#allocation8], 512   ;;  %p2486_p4 = pmov %p2485_p13 }
  0x78   : > { %1924 = vsyncadd (%p2486_p4), [#allocation8], 4294966784  ;;  %p2487_p3 = pmov %p2486_p4 }
  0x7a   : > { %1926 = dma.done.wait (%p2487_p3), [#allocation11], 272   ;;  %p2488_p1 = pmov %p2487_p3 }
  0x7c   : > { %1928 = vsyncadd (%p2488_p1), [#allocation11], 4294967024  ;;  %p2489_p8 = pmov %p2488_p1 }
  0x7d   : > { %p2490_p0 = pmov %p2488_p1 }
  0x7e   : > { %1930 = dma.done.wait (%p2489_p8), [#allocation14], 272  }
  0x7f   : > { %1932 = vsyncadd (%p2490_p0), [#allocation14], 4294967024  ;;  %p2491_p11 = pmov %p2490_p0 }
  0x80   : > { %p2492_p6 = pmov %p2490_p0 }
  0x81   : > { %1934 = dma.done.wait (%p2491_p11), [#allocation17], 16  }
  0x82   : > { %1936 = vsyncadd (%p2492_p6), [#allocation17], 4294967280  ;;  %s620_s17 = sand.u32 1, %s1951_s23  }
  0x83   : > { %s2308_s4 = scalar_lea.vmem [#allocation18], %s620_s17 }
  0x84   : > { %1938 = dma.done.wait (%p2245_p9), %s575_s28, 16  }
  0x85   : > { %1940 = vsyncadd (%p2245_p9), %s575_s28, 4294967280  ;;  %p683_p7 = scmp.lt.s32.totalorder %s2108_s16, 3  ;;  %s2493_s19 = sld [smem:[#allocation36_spill]]  ;;  %v1388_v0 = vld [vmem:[#allocation7 + $0x8] sm:$0xff]  ;;  %v1387_v3 = vld [vmem:[#allocation7] sm:$0xff]  ;;  %vm721_vm0 = vcmask 261120  }
  0x86   : > { %s2494_s21 = sld [smem:[#allocation37_spill]]  ;;  %731 = vmatpush.bf16.msra.mxu0 %v1388_v0  ;;  %s1983_s18 = smov 96   ;;  %v762_v11 = vld [vmem:[%s577_s13] sm:$0x1]  ;;  %vm769_vm1 = vcmask 64512   ;;  %vm787_vm2 = vcmask 1043456  }
  0x87   : > { %s684_s20 = scalar_select %p683_p7, %s2108_s16, 3  ;;  %v1314_v12 = vadd.f32 -1.0, %v762_v11  ;;  %v1390_v25 = vld [vmem:[#allocation9 + $0x8] sm:$0xff]  ;;  %v1389_v32 = vld [vmem:[#allocation9] sm:$0xff]  ;;  %v1985_v40 = vmov 32.0   ;;  %v1392_v52 = vld [vmem:[#allocation10 + $0x8] sm:$0xff] }
  0x88   : > { %s1984_s15 = smov 64   ;;  %830 = vmatpush.bf16.msra.mxu3 %v1390_v25  ;;  %v1391_v53 = vld [vmem:[#allocation10] sm:$0xff]  ;;  %s2495_s29 = sld [smem:[#allocation40_spill]] }
  0x89   : > { %s1301_s22 = sshll.u32 %s684_s20, 3  ;;  %v764_v13 = vmul.f32 1e+09, %v1314_v12  ;;  %s687_s12 = sld [smem:[#allocation3 + %s2108_s16]] }
  0x8a   : > { %732 = vmatpush.bf16.msra.mxu0 %v1387_v3  ;;  %s2496_s17 = sld [smem:[#allocation42_spill]]  ;;  %s1093_s13 = scalar_lea.sflag [#allocation6], %s2284_s26 }
  0x8b   : > { %s686_s30 = scalar_lea.vmem %s2493_s19, %s1301_s22  ;;  %v766_v14 = vperm.slane %v764_v13, 0  ;;  %s694_s22 = sld [smem:[#allocation3 + %s2108_s16]] }
  0x8c   : > { %v701_v1 = vld [vmem:[%s686_s30] sm:$0xff]  ;;  %831 = vmatpush.bf16.msra.mxu3 %v1389_v32  ;;  %s2497_s19 = sld [smem:[#allocation43_spill]] }
  0x8d   : > { %v702_v2 = vld [vmem:[%s2494_s21] sm:$0xff]  ;;  %s2498_s21 = sld [smem:[#allocation44_spill]] }
  0x8e   : > { %v703_v4 = vadd.f32 %v702_v2, %v701_v1  ;;  %v1400_v54 = vld [vmem:[%s2495_s29 + $0x38] sm:$0xff]  ;;  %v1399_v3 = vld [vmem:[%s2495_s29 + $0x30] sm:$0xff] }
  0x8f   : > { %978 = vmatpush.bf16.msrb.mxu0 %v1400_v54  ;;  %p688_p9 = scmp.lt.s32.totalorder %s687_s12, 2 }
  0x90   : > { %v704_v5 = vpack.c.bf16 %v703_v4, %v703_v4 }
  0x91   : > { %s2516_s12 = smov (!%p688_p9, %s687_s12), 2  ;;  %p695_p10 = scmp.lt.s32.totalorder %s694_s22, 2 }
  0x92   : > { %1312 = vmatmul.msk.bf16.vlgmr.msra.gmra.mxu0 %vm721_vm0, %v704_v5  ;;  %v1397_v5 = vld [vmem:[%s2495_s29 + $0x20] sm:$0xff]  ;;  %s1386_s8 = sshll.u32 %s2516_s12, 4  ;;  %s682_s12 = scalar_lea.vmem [#allocation19], %s2284_s26 }
  0x93   : > { %979 = vmatpush.bf16.msrb.mxu0 %v1399_v3  ;;  %s692_s20 = scalar_lea.vmem %s2496_s17, %s1386_s8  ;;  %s2518_s22 = smov (!%p695_p10, %s694_s22), 2 }
  0x94   : > { %s697_s30 = scalar_lea.vmem %s2497_s19, %s2518_s22  ;;  %s1103_s8 = sshll.u32 %s682_s12, 4  ;;  %s1104_s8 = int_to_ptr.vmem [resolvable:$true] %s1103_s8 }
  0x95   : > { %s1879_s22 = scalar_lea.hbm %s2498_s21, 4 }
 0x10f   : > { %v734_v6 = vpop.f32.mrf.mxu0 }
 0x110   : > { %v738_v7 = vpack.c.bf16 %v734_v6, %v734_v6  ;;  %v1396_v6 = vld [vmem:[%s2495_s29 + $0x18] sm:$0xff] }
 0x112   : > { %740 = vrot.lane.b32.xlu0 %v738_v7, %s1983_s18  ;;  %s1101_s18 = scalar_lea.hbm %s2498_s21, %s2108_s16 }
 0x113   : > { %s1105_s28 = sshll.u32 %s1101_s18, 4  ;;  %s1106_s28 = int_to_ptr.hbm [resolvable:$true] %s1105_s28 }
 0x114   : > { %s1873_s17 = sshra.s32 %s1106_s28, 4  ;;  %s1874_s17 = int_to_ptr.hbm [resolvable:$true] %s1873_s17 }
 0x115   : > { %p1880_p4 = scmp.lt.s32.totalorder %s1874_s17, %s2498_s21 }
 0x117   : > { %v736_v8 = vpop.f32.mrf.mxu0 }
 0x118   : > { %v1394_v8 = vld [vmem:[%s2495_s29 + $0x8] sm:$0xff] }
 0x184   : > { %v741_v9 = vpop.permute.xlu0 %740 }
 0x185   : > { %v746_v10 = vsel %vm721_vm0, %v741_v9, 0  ;;  %v1393_v9 = vld [vmem:[%s2495_s29] sm:$0xff] }
 0x186   : > { %755 = vmatpush.bf16.xpose.msra.mxu1 %v746_v10  ;;  %v1561_v10 = vld [vmem:[#allocation12] ss:$0 sm:$0xff] }
 0x18d   : > { %1313 = vmatmul.msk.bf16.vlgmr.msra.gmra.mxu1 %vm721_vm0, %v738_v7 }
 0x20a   : > { %v757_v15 = vpop.f32.mrf.mxu1 }
 0x20b   : > { %v761_v16 = vmul.f32 0.17677669, %v757_v15 }
 0x20d   : > { %v768_v17 = vadd.f32 %v766_v14, %v761_v16 }
 0x20f   : > { %v770_v18 = vsel %vm769_vm1, %v768_v17, -inf }
 0x210   : > { %771 = vmax.xlane.f32.xlu0 %v770_v18 }
 0x212   : > { %v759_v19 = vpop.f32.mrf.mxu1 }
 0x283   : > { %v772_v20 = vpop.xlane.xlu0 %771 }
 0x284   : > { %v773_v21 = vsub.f32 %v768_v17, %v772_v20 }
 0x286   : > { %v774_v22 = vmul.f32 1.442695, %v773_v21 }
 0x288   : > { %1563 = vpow2.f32 %v774_v22 }
 0x28e   : > { %v1564_v23 = vpop.eup %1563 }
 0x28f   : > { %v776_v24 = vsel %vm769_vm1, %v1564_v23, 0.0 }
 0x290   : > { %777 = vadd.xlane.f32.xlu1 %v776_v24  ;;  %v1562_v24 = vld [vmem:[#allocation13] ss:$0 sm:$0xff] }
 0x2a9   : > { %782 = vrot.lane.b32.xlu1 %v738_v7, %s1984_s15  ;;  %v1395_v7 = vld [vmem:[%s2495_s29 + $0x10] sm:$0xff] }
 0x303   : > { %v778_v26 = vpop.xlane.xlu1 %777 }
 0x304   : > { %1565 = vrcp.f32 %v778_v26 }
 0x305   : > { %1567 = vrcp.f32 %v1985_v40 }
 0x30a   : > { %v1566_v27 = vpop.eup %1565 }
 0x30b   : > { %v780_v28 = vmul.f32 %v1566_v27, %v1564_v23  ;;  %v1568_v41 = vpop.eup %1567 }
 0x30c   : > { %v842_v42 = vmul.f32 32.0, %v1568_v41  ;;  %vm846_vm3 = vweird.f32 %v1568_v41 }
 0x30d   : > { %v781_v31 = vpack.c.bf16 %v780_v28, %v780_v28 }
 0x30e   : > { %v843_v43 = vsub.f32 1.0, %v842_v42 }
 0x310   : > { %v844_v44 = vmul.f32 %v1568_v41, %v843_v43 }
 0x312   : > { %v845_v45 = vadd.f32 %v1568_v41, %v844_v44 }
 0x314   : > { %v2332_v46 = vsel %vm846_vm3, %v1568_v41, %v845_v45 }
 0x31b   : > { %v783_v29 = vpop.permute.xlu1 %782 }
 0x31c   : > { %v789_v30 = vsel %vm787_vm2, %v783_v29, 0 }
 0x31d   : > { %798 = vmatpush.bf16.msra.mxu2 %v789_v30 }
 0x320   : > { %1315 = vmatmul.msk.bf16.vlgmr.msra.gmra.mxu2 %vm769_vm1, %v781_v31 }
 0x321   : > { %897 = vmatpush.bf16.msrb.mxu2 %v1392_v52 }
 0x325   : > { %898 = vmatpush.bf16.msrb.mxu2 %v1391_v53 }
 0x3a3   : > { %v800_v33 = vpop.f32.mrf.mxu2 }
 0x3a4   : > { %v804_v34 = vpack.c.bf16 %v800_v33, %v800_v33 }
 0x3a6   : > { %1324 = vmatmul.msk.bf16.vlgmr.msra.gmra.mxu3 %vm721_vm0, %v804_v34 }
 0x3ab   : > { %v802_v35 = vpop.f32.mrf.mxu2 }
 0x3ac   : > { %v1402_v35 = vld [vmem:[#allocation15 + $0x8] sm:$0xff] }
 0x3ad   : > { %1046 = vmatpush.bf16.msrb.mxu1 %v1402_v35 }
 0x429   : > { %v833_v36 = vpop.f32.mrf.mxu3 }
 0x42a   : > { %v837_v37 = vadd.f32 %v833_v36, %v703_v4  ;;  %v1398_v4 = vld [vmem:[%s2495_s29 + $0x28] sm:$0xff]  ;;  %v1401_v36 = vld [vmem:[#allocation15] sm:$0xff] }
 0x42b   : > { %980 = vmatpush.bf16.msrb.mxu0 %v1398_v4  ;;  %1047 = vmatpush.bf16.msrb.mxu1 %v1401_v36 }
 0x42c   : > { %v838_v38 = vsel %vm721_vm0, %v837_v37, 0.0 }
 0x42d   : > { %839 = vadd.xlane.f32.xlu2 %v838_v38 }
 0x42f   : > { %981 = vmatpush.bf16.msrb.mxu0 %v1397_v5 }
 0x431   : > { %v835_v39 = vpop.f32.mrf.mxu3 }
 0x433   : > { %982 = vmatpush.bf16.msrb.mxu0 %v1396_v6 }
 0x437   : > { %983 = vmatpush.bf16.msrb.mxu0 %v1395_v7 }
 0x43b   : > { %984 = vmatpush.bf16.msrb.mxu0 %v1394_v8 }
 0x43f   : > { %985 = vmatpush.bf16.msrb.mxu0 %v1393_v9 }
 0x4a0   : > { %v840_v47 = vpop.xlane.xlu2 %839 }
 0x4a1   : > { %v848_v48 = vmul.f32 %v2332_v46, %v840_v47 }
 0x4a3   : > { %v849_v49 = vsub.f32 %v837_v37, %v848_v48  ;;  %v1404_v37 = vld [vmem:[%s692_s20 + $0x8] sm:$0xff] }
 0x4a4   : > { %1081 = vmatpush.bf16.msrb.mxu3 %v1404_v37 }
 0x4a5   : > { %v850_v50 = vmul.f32 %v849_v49, %v849_v49 }
 0x4a7   : > { %v851_v51 = vsel %vm721_vm0, %v850_v50, 0.0 }
 0x4a8   : > { %852 = vadd.xlane.f32.xlu2 %v851_v51  ;;  %v1024_v51 = vld [vmem:[#allocation16] sm:$0x1] }
 0x51b   : > { %v853_v55 = vpop.xlane.xlu2 %852 }
 0x51c   : > { %v854_v56 = vmul.f32 %v853_v55, %v2332_v46 }
 0x51e   : > { %v855_v57 = vadd.f32 1e-05, %v854_v56 }
 0x520   : > { %1569 = vrsqrt.f32 %v855_v57  ;;  %vm862_vm5 = vweird.f32 %v855_v57 }
 0x526   : > { %v1570_v58 = vpop.eup %1569 }
 0x527   : > { %v857_v59 = vmul.f32 %v1570_v58, %v855_v57  ;;  %vm863_vm4 = vweird.f32 %v1570_v58  ;;  %v1088_v57 = vld [vmem:[%s2308_s4] sm:$0x1] }
 0x528   : > { %vm864_vm6 = vmor %vm862_vm5, %vm863_vm4  ;;  %vm1089_vm10 = vcmp.gt.f32.partialorder %v1088_v57, 0.5 }
 0x529   : > { %v858_v60 = vmul.f32 %v1570_v58, %v857_v59 }
 0x52b   : > { %v859_v61 = vmul.f32 0.5, %v858_v60 }
 0x52d   : > { %v860_v62 = vsub.f32 1.5, %v859_v61 }
 0x52f   : > { %v861_v63 = vmul.f32 %v1570_v58, %v860_v62 }
 0x531   : > { %v865_v0 = vsel %vm864_vm6, %v1570_v58, %v861_v63  ;;  %v1059_v58 = vld [vmem:[%s697_s30] sm:$0x1] }
 0x532   : > { %v866_v1 = vmul.f32 %v865_v0, %v849_v49 }
 0x534   : > { %v867_v2 = vpack.c.bf16 %v866_v1, %v866_v1 }
 0x536   : > { %1333 = vmatmul.msk.bf16.vlgmr.msrb.gmra.mxu2 %vm721_vm0, %v867_v2 }
 0x5b9   : > { %v900_v11 = vpop.f32.mrf.mxu2 }
 0x5ba   : > { %v901_v12 = vadd.f32 %v1561_v10, %v900_v11 }
 0x5bc   : > { %v904_v13 = vmul.f32 %v901_v12, %v901_v12 }
 0x5be   : > { %v905_v14 = vmul.f32 %v904_v13, %v901_v12 }
 0x5c0   : > { %v906_v15 = vmul.f32 0.044715, %v905_v14 }
 0x5c1   : > { %v902_v16 = vpop.f32.mrf.mxu2 }
 0x5c2   : > { %v907_v17 = vadd.f32 %v906_v15, %v901_v12 }
 0x5c4   : > { %v908_v18 = vmul.f32 0.7978846, %v907_v17 }
 0x5c6   : > { %1571 = vtanh.f32 %v908_v18 }
 0x5cc   : > { %v1572_v19 = vpop.eup %1571 }
 0x5cd   : > { %v910_v20 = vadd.f32 1.0, %v1572_v19 }
 0x5cf   : > { %v911_v21 = vmul.f32 0.5, %v910_v20 }
 0x5d1   : > { %v912_v22 = vmul.f32 %v911_v21, %v901_v12 }
 0x5d3   : > { %v913_v23 = vpack.c.bf16 %v912_v22, %v912_v22 }
 0x5d5   : > { %986 = vmatmul.bf16.vlgmr.msrb.gmra.mxu0 %v913_v23 }
 0x652   : > { %v987_v25 = vpop.f32.mrf.mxu0 }
 0x653   : > { %v991_v26 = vadd.f32 %v987_v25, %v866_v1 }
 0x655   : > { %v996_v27 = vadd.f32 %v1562_v24, %v991_v26 }
 0x657   : > { %v997_v28 = vsel %vm721_vm0, %v996_v27, 0.0 }
 0x658   : > { %998 = vadd.xlane.f32.xlu2 %v997_v28 }
 0x65a   : > { %v989_v29 = vpop.f32.mrf.mxu0 }
 0x6cb   : > { %v999_v30 = vpop.xlane.xlu2 %998 }
 0x6cc   : > { %v1000_v31 = vmul.f32 %v999_v30, %v2332_v46 }
 0x6ce   : > { %v1001_v32 = vsub.f32 %v996_v27, %v1000_v31 }
 0x6d0   : > { %v1002_v33 = vmul.f32 %v1001_v32, %v1001_v32 }
 0x6d2   : > { %v1003_v34 = vsel %vm721_vm0, %v1002_v33, 0.0 }
 0x6d3   : > { %1004 = vadd.xlane.f32.xlu2 %v1003_v34 }
 0x746   : > { %v1005_v38 = vpop.xlane.xlu2 %1004 }
 0x747   : > { %v1006_v39 = vmul.f32 %v1005_v38, %v2332_v46  ;;  %v1403_v46 = vld [vmem:[%s692_s20] sm:$0xff]  ;;  %s1875_s20 = scalar_lea.hbm %s1874_s17, 1 }
 0x748   : > { %1082 = vmatpush.bf16.msrb.mxu3 %v1403_v46  ;;  %p1876_p12 = scmp.ne.s32.totalorder %s1874_s17, %s1875_s20  ;;  %p1881_p3 = scmp.lt.s32.totalorder %s1879_s22, %s1875_s20 }
 0x749   : > { %v1007_v40 = vadd.f32 1e-05, %v1006_v39 }
 0x74a   : > { %p1877_p5 = pnand %p1876_p12, %p2176_p2  ;;  %p1882_p1 = por %p1881_p3, %p1880_p4 }
 0x74b   : > { %1573 = vrsqrt.f32 %v1007_v40  ;;  %vm1014_vm8 = vweird.f32 %v1007_v40 }
 0x74c   : > { %p1878_p13 = pneg %p1877_p5 }
 0x74e   : > { %p1883_p8 = pnand %p1882_p1, %p1878_p13 }
 0x751   : > { %v1574_v41 = vpop.eup %1573 }
 0x752   : > { %v1009_v42 = vmul.f32 %v1574_v41, %v1007_v40  ;;  %vm1015_vm7 = vweird.f32 %v1574_v41 }
 0x753   : > { %vm1016_vm9 = vmor %vm1014_vm8, %vm1015_vm7 }
 0x754   : > { %v1010_v43 = vmul.f32 %v1574_v41, %v1009_v42 }
 0x756   : > { %v1011_v44 = vmul.f32 0.5, %v1010_v43 }
 0x758   : > { %v1012_v45 = vsub.f32 1.5, %v1011_v44 }
 0x75a   : > { %v1013_v47 = vmul.f32 %v1574_v41, %v1012_v45 }
 0x75c   : > { %v1017_v48 = vsel %vm1016_vm9, %v1574_v41, %v1013_v47 }
 0x75d   : > { %v1018_v49 = vmul.f32 %v1017_v48, %v1001_v32 }
 0x75f   : > { %v1019_v50 = vpack.c.bf16 %v1018_v49, %v1018_v49 }
 0x761   : > { %1374 = vmatmul.msk.bf16.vlgmr.msrb.gmra.mxu1 %vm721_vm0, %v1019_v50 }
 0x7de   : > { %v1049_v52 = vpop.f32.mrf.mxu1 }
 0x7df   : > { %v1050_v53 = vadd.f32 %v1049_v52, %v1024_v51 }
 0x7e1   : > { %1575 = vtanh.f32 %v1050_v53 }
 0x7e6   : > { %v1051_v54 = vpop.f32.mrf.mxu1 }
 0x7e7   : > { %v1576_v55 = vpop.eup %1575 }
 0x7e8   : > { %v1054_v56 = vpack.c.bf16 %v1576_v55, %v1576_v55 }
 0x7ea   : > { %1383 = vmatmul.msk.bf16.vlgmr.msrb.gmra.mxu3 %vm721_vm0, %v1054_v56 }
 0x86d   : > { %v1084_v59 = vpop.f32.mrf.mxu3 }
 0x86e   : > { %v1085_v60 = vadd.f32 %v1084_v59, %v1059_v58 }
 0x870   : > { %v1090_v61 = vsel %vm1089_vm10, %v1085_v60, -1000.0 }
 0x871   : > { %1091 = vst [vmem:[%s682_s12] sm:$0x1] %v1090_v61 }
 0x872   : > { %1886 = shalt.err (!%p1883_p8)
}
 0x873   : > { %1439 = dma.vmem_to_hbm [thread:$0]  (%p2176_p2), %s1104_s8, 16, %s1106_s28, %s1093_s13  }
 0x875   : > { %v1086_v62 = vpop.f32.mrf.mxu3 }
 0x876 PF: > { %s2500_s26 = sld [smem:[#allocation30_spill]]  ;;  %p1491_p0 = scmp.ge.s32.totalorder %s1971_s27, 2 }
 0x877   : > { %s2501_s19 = sld [smem:[#allocation35_spill]] }
 0x87c   : > { %s1117_s30 = sand.u32 1, %s2500_s26  }
 0x87d   : > { %p2502_p11 = scmp.ne.s32.totalorder %s2501_s19, 0  ;;  %s1118_s1 = scalar_lea.sflag [#allocation6], %s1117_s30 }
 0x87f   : > { %p1473_p6 = pnand %p1491_p0, %p2502_p11 }
 0x881   : > { %p1474_p7 = pneg %p1473_p6 }
 0x883   : > { %1942 = dma.done.wait (%p1474_p7), %s1118_s1, 16  }
 0x884   : > { %1944 = vsyncadd (%p1474_p7), %s1118_s1, 4294967280  ;;  %s2503_s27 = sld [smem:[#allocation32_spill]]  ;;  %s2506_s22 = smov %s1951_s23 }
 0x885   : > { %s2504_s3 = sld [smem:[#allocation31_spill]]  ;;  %s2507_s23 = smov %s1955_s24 }
 0x886   : > { %s2505_s26 = sld [smem:[#allocation33_spill]]  ;;  %s2508_s24 = smov %s2254_s0 }
 0x887   : > { %s2509_s0 = smov %s1963_s25 }
 0x88a   : > { %p40_p2 = scmp.ge.s32.totalorder %s2503_s27, 6  }
 0x88b   : > { %s2510_s25 = smov %s2504_s3 }
 0x88c   :  { %42 = sbr.rel (!%p40_p2) target bundleno = 25 (0x19), region = 169 }
 0x891   :  { %1123 = vsyncpa [#allocation5], 1 }
 0x892   :  { %1125 = vsyncpa [#allocation5 + $0x1], 1 }
 0x893   :  { %1126 = vsyncpa [#allocation8], 1 }
 0x894   :  { %1127 = vsyncpa [#allocation11], 1 }
 0x895   :  { %1128 = vsyncpa [#allocation14], 1 }
 0x896   :  { %1129 = vsyncpa [#allocation17], 1 }
 0x897   :  { %1130 = vsyncpa [#allocation6], 1 }
 0x898   :  { %1132 = vsyncpa [#allocation6 + $0x1], 1 }

</bundles_post_ra>
